<compile_context>
chip_gen: v7x
topology: tpu7x:2x2x1
jax: 0.10.0
libtpu: 0.0.40
codegen_flags: <defaults>
</compile_context>

<pallas_src>
import jax
import jax.numpy as jnp
from jax.experimental import pallas as pl
from jax.experimental.pallas import tpu as pltpu

LOG_SIG_MIN = -20.0
LOG_SIG_MAX = 2.0
LANE = 128            # f32 vreg lane width
MAX_TB = 512          # batch tile cap (rows) for large batches


def _round_up(x, m):
    return ((x + m - 1) // m) * m


def actor_forward_kernel(x_ref, w1_ref, b1_ref, w2_ref, b2_ref,
                         wh_ref, bh_ref, out_ref):
    # State tile (TB, Din_p) f32 -> bf16 for the MXU push.
    x = x_ref[...].astype(jnp.bfloat16)

    # fc1 + relu   (f32 accumulation, f32 elementwise)
    h1 = jnp.dot(x, w1_ref[...], preferred_element_type=jnp.float32) + b1_ref[...]
    h1 = jnp.maximum(h1, 0.0)

    # fc2 + relu
    h2 = jnp.dot(h1.astype(jnp.bfloat16), w2_ref[...],
                 preferred_element_type=jnp.float32) + b2_ref[...]
    h2 = jnp.maximum(h2, 0.0)

    # Fused heads: lanes [0,2) = mean, [2,4) = log_std, lanes [4,128) = padding.
    head = jnp.dot(h2.astype(jnp.bfloat16), wh_ref[...],
                   preferred_element_type=jnp.float32) + bh_ref[...]

    # Clamp lanes >= 2 (log_std + padding); mean lanes pass through.  Padding
    # lanes are discarded in the wrapper, so clamping them is free & harmless.
    col = jax.lax.broadcasted_iota(jnp.int32, head.shape, 1)
    out_ref[...] = jnp.where(col >= 2,
                             jnp.clip(head, LOG_SIG_MIN, LOG_SIG_MAX),
                             head)


def actor_forward(state, params):
    """state: (B, num_inputs) f32.  Returns (mean, log_std), each (B, 2) f32."""
    w1, b1, w2, b2, wm, bm, ws, bs = params
    B, d_in = state.shape
    d1 = w1.shape[1]
    d2 = w2.shape[1]

    # Padded (lane-aligned) problem sizes.
    d_in_p = _round_up(d_in, LANE)
    d1_p = _round_up(d1, LANE)
    d2_p = _round_up(d2, LANE)
    d_out_p = LANE                       # lane-dense output slab, payload = 4 cols

    # Batch tiling: TB multiple of 8, capped; pad batch to a whole number of tiles.
    TB = min(_round_up(B, 8), MAX_TB)
    B_p = _round_up(B, TB)

    def pad2(a, rows, cols):
        return jnp.pad(a, ((0, rows - a.shape[0]), (0, cols - a.shape[1])))

    x_p = pad2(state.astype(jnp.float32), B_p, d_in_p)
    w1_p = pad2(w1, d_in_p, d1_p).astype(jnp.bfloat16)
    b1_p = pad2(b1, 1, d1_p).astype(jnp.float32)
    w2_p = pad2(w2, d1_p, d2_p).astype(jnp.bfloat16)
    b2_p = pad2(b2, 1, d2_p).astype(jnp.float32)

    # Fuse the two heads into a single (d2, 4) matmul, padded to 128 lanes.
    wh = jnp.concatenate([wm, ws], axis=1)           # (d2, 4)
    bh = jnp.concatenate([bm, bs], axis=1)           # (1, 4)
    wh_p = pad2(wh, d2_p, d_out_p).astype(jnp.bfloat16)
    bh_p = pad2(bh, 1, d_out_p).astype(jnp.float32)

    const = lambda i: (0, 0)             # weights stay VMEM-resident across batch tiles

    out = pl.pallas_call(
        actor_forward_kernel,
        out_shape=jax.ShapeDtypeStruct((B_p, d_out_p), jnp.float32),
        grid_spec=pltpu.PrefetchScalarGridSpec(
            num_scalar_prefetch=0,
            grid=(B_p // TB,),
            in_specs=[
                pl.BlockSpec((TB, d_in_p), lambda i: (i, 0)),   # state tile
                pl.BlockSpec((d_in_p, d1_p), const),            # W1 (bf16)
                pl.BlockSpec((1, d1_p), const),                 # b1
                pl.BlockSpec((d1_p, d2_p), const),              # W2 (bf16)
                pl.BlockSpec((1, d2_p), const),                 # b2
                pl.BlockSpec((d2_p, d_out_p), const),           # fused head W (bf16)
                pl.BlockSpec((1, d_out_p), const),              # fused head b
            ],
            out_specs=pl.BlockSpec((TB, d_out_p), lambda i: (i, 0)),
        ),
        compiler_params=pltpu.CompilerParams(
            dimension_semantics=("parallel",)),
    )(x_p, w1_p, b1_p, w2_p, b2_p, wh_p, bh_p)

    mean = out[:B, 0:2]
    log_std = out[:B, 2:4]
    return mean, log_std


def init_params(key, num_inputs, fc1_dims, fc2_dims):
    """Deterministic synthetic init (shapes match the nn.Linear layers).

    Weights are stored transposed: (in_features, out_features); biases (1, out)."""
    ks = jax.random.split(key, 8)

    def lin(kw, kb, fan_in, fan_out):
        scale = 1.0 / jnp.sqrt(jnp.float32(fan_in))
        w = jax.random.uniform(kw, (fan_in, fan_out), jnp.float32, -scale, scale)
        b = jax.random.uniform(kb, (1, fan_out), jnp.float32, -scale, scale)
        return w, b

    w1, b1 = lin(ks[0], ks[1], num_inputs, fc1_dims)
    w2, b2 = lin(ks[2], ks[3], fc1_dims, fc2_dims)
    wm, bm = lin(ks[4], ks[5], fc2_dims, 2)
    ws, bs = lin(ks[6], ks[7], fc2_dims, 2)
    return (w1, b1, w2, b2, wm, bm, ws, bs)


def actor_forward_ref(state, params):
    """Pure-JAX f32 reference (module semantics)."""
    w1, b1, w2, b2, wm, bm, ws, bs = params
    h1 = jnp.maximum(state @ w1 + b1, 0.0)
    h2 = jnp.maximum(h1 @ w2 + b2, 0.0)
    mean = h2 @ wm + bm
    log_std = jnp.clip(h2 @ ws + bs, LOG_SIG_MIN, LOG_SIG_MAX)
    return mean, log_std


# TODO(synk): sample(), the Adam optimizer and checkpoint I/O are not part of
# forward() and are intentionally not implemented in the kernel.

if __name__ == "__main__":
    key = jax.random.PRNGKey(0)
    k_param, k_state = jax.random.split(key)

    B = 8            # batch
    num_inputs = 32  # state dimensionality
    fc1_dims = 64
    fc2_dims = 64

    params = init_params(k_param, num_inputs, fc1_dims, fc2_dims)
    state = jax.random.normal(k_state, (B, num_inputs), jnp.float32)

    fwd = jax.jit(actor_forward)
    mean, log_std = fwd(state, params)
    jax.block_until_ready((mean, log_std))

    mean_ref, log_std_ref = actor_forward_ref(state, params)
    assert mean.shape == (B, 2) and log_std.shape == (B, 2)
    # Matmul operands are bf16 (f32 accumulation) -> compare with bf16-level tolerance.
    assert jnp.allclose(mean, mean_ref, atol=5e-2, rtol=5e-2)
    assert jnp.allclose(log_std, log_std_ref, atol=5e-2, rtol=5e-2)

    print("KERNEL_OK")
</pallas_src>

<mosaic_0001>
module attributes {stable_mosaic.version = 11 : i64} {
  func.func @actor_forward_kernel(%arg0: i32, %arg1: memref<8x128xf32, #tpu.memory_space<vmem>>, %arg2: memref<128x128xbf16, #tpu.memory_space<vmem>>, %arg3: memref<1x128xf32, #tpu.memory_space<vmem>>, %arg4: memref<128x128xbf16, #tpu.memory_space<vmem>>, %arg5: memref<1x128xf32, #tpu.memory_space<vmem>>, %arg6: memref<128x128xbf16, #tpu.memory_space<vmem>>, %arg7: memref<1x128xf32, #tpu.memory_space<vmem>>, %arg8: memref<8x128xf32, #tpu.memory_space<vmem>>) attributes {dimension_semantics = [#tpu.dimension_semantics<parallel>], iteration_bounds = array<i64: 1>, scalar_prefetch = 0 : i64, scratch_operands = 0 : i64, tpu.core_type = #tpu.core_type<tc>, window_params = [{transform_indices = @transform_0, window_bounds = array<i64: 8, 128>}, {pipeline_mode = #tpu.pipeline_mode<synchronous>, transform_indices = @transform_1, window_bounds = array<i64: 128, 128>}, {pipeline_mode = #tpu.pipeline_mode<synchronous>, transform_indices = @transform_2, window_bounds = array<i64: 1, 128>}, {pipeline_mode = #tpu.pipeline_mode<synchronous>, transform_indices = @transform_3, window_bounds = array<i64: 128, 128>}, {pipeline_mode = #tpu.pipeline_mode<synchronous>, transform_indices = @transform_4, window_bounds = array<i64: 1, 128>}, {pipeline_mode = #tpu.pipeline_mode<synchronous>, transform_indices = @transform_5, window_bounds = array<i64: 128, 128>}, {pipeline_mode = #tpu.pipeline_mode<synchronous>, transform_indices = @transform_6, window_bounds = array<i64: 1, 128>}, {transform_indices = @transform_7, window_bounds = array<i64: 8, 128>}]} {
    %c0 = arith.constant 0 : index
    %c0_0 = arith.constant 0 : index
    %0 = vector.load %arg1[%c0, %c0_0] : memref<8x128xf32, #tpu.memory_space<vmem>>, vector<8x128xf32>
    %1 = arith.truncf %0 : vector<8x128xf32> to vector<8x128xbf16>
    %c0_1 = arith.constant 0 : index
    %c0_2 = arith.constant 0 : index
    %2 = vector.load %arg2[%c0_1, %c0_2] : memref<128x128xbf16, #tpu.memory_space<vmem>>, vector<128x128xbf16>
    %cst = arith.constant dense<0.000000e+00> : vector<8x128xf32>
    %3 = tpu.matmul %1, %2, %cst {dimension_numbers = #tpu.dot_dimension_numbers<[1], [0], [0], [1], [0, 0, 1, 1], [], []>} : vector<8x128xbf16>, vector<128x128xbf16>, vector<8x128xf32> -> vector<8x128xf32>
    %c0_3 = arith.constant 0 : index
    %c0_4 = arith.constant 0 : index
    %4 = vector.load %arg3[%c0_3, %c0_4] : memref<1x128xf32, #tpu.memory_space<vmem>>, vector<1x128xf32>
    %5 = vector.broadcast %4 : vector<1x128xf32> to vector<8x128xf32>
    %6 = arith.addf %3, %5 : vector<8x128xf32>
    %cst_5 = arith.constant 0.000000e+00 : f32
    %7 = vector.broadcast %cst_5 : f32 to vector<8x128xf32>
    %8 = arith.maximumf %6, %7 : vector<8x128xf32>
    %9 = arith.truncf %8 : vector<8x128xf32> to vector<8x128xbf16>
    %c0_6 = arith.constant 0 : index
    %c0_7 = arith.constant 0 : index
    %10 = vector.load %arg4[%c0_6, %c0_7] : memref<128x128xbf16, #tpu.memory_space<vmem>>, vector<128x128xbf16>
    %cst_8 = arith.constant dense<0.000000e+00> : vector<8x128xf32>
    %11 = tpu.matmul %9, %10, %cst_8 {dimension_numbers = #tpu.dot_dimension_numbers<[1], [0], [0], [1], [0, 0, 1, 1], [], []>} : vector<8x128xbf16>, vector<128x128xbf16>, vector<8x128xf32> -> vector<8x128xf32>
    %c0_9 = arith.constant 0 : index
    %c0_10 = arith.constant 0 : index
    %12 = vector.load %arg5[%c0_9, %c0_10] : memref<1x128xf32, #tpu.memory_space<vmem>>, vector<1x128xf32>
    %13 = vector.broadcast %12 : vector<1x128xf32> to vector<8x128xf32>
    %14 = arith.addf %11, %13 : vector<8x128xf32>
    %cst_11 = arith.constant 0.000000e+00 : f32
    %15 = vector.broadcast %cst_11 : f32 to vector<8x128xf32>
    %16 = arith.maximumf %14, %15 : vector<8x128xf32>
    %17 = arith.truncf %16 : vector<8x128xf32> to vector<8x128xbf16>
    %c0_12 = arith.constant 0 : index
    %c0_13 = arith.constant 0 : index
    %18 = vector.load %arg6[%c0_12, %c0_13] : memref<128x128xbf16, #tpu.memory_space<vmem>>, vector<128x128xbf16>
    %cst_14 = arith.constant dense<0.000000e+00> : vector<8x128xf32>
    %19 = tpu.matmul %17, %18, %cst_14 {dimension_numbers = #tpu.dot_dimension_numbers<[1], [0], [0], [1], [0, 0, 1, 1], [], []>} : vector<8x128xbf16>, vector<128x128xbf16>, vector<8x128xf32> -> vector<8x128xf32>
    %c0_15 = arith.constant 0 : index
    %c0_16 = arith.constant 0 : index
    %20 = vector.load %arg7[%c0_15, %c0_16] : memref<1x128xf32, #tpu.memory_space<vmem>>, vector<1x128xf32>
    %21 = vector.broadcast %20 : vector<1x128xf32> to vector<8x128xf32>
    %22 = arith.addf %19, %21 : vector<8x128xf32>
    %23 = tpu.iota {dimensions = array<i32: 1>} : vector<8x128xi32>
    %c2_i32 = arith.constant 2 : i32
    %24 = vector.broadcast %c2_i32 : i32 to vector<8x128xi32>
    %25 = arith.cmpi sge, %23, %24 : vector<8x128xi32>
    %cst_17 = arith.constant -2.000000e+01 : f32
    %cst_18 = arith.constant 2.000000e+00 : f32
    %26 = vector.broadcast %cst_17 : f32 to vector<8x128xf32>
    %27 = arith.maximumf %26, %22 : vector<8x128xf32>
    %28 = vector.broadcast %cst_18 : f32 to vector<8x128xf32>
    %29 = arith.minimumf %28, %27 : vector<8x128xf32>
    %30 = arith.select %25, %29, %22 : vector<8x128xi1>, vector<8x128xf32>
    %c0_19 = arith.constant 0 : index
    %c0_20 = arith.constant 0 : index
    %31 = vector.load %arg8[%c0_19, %c0_20] : memref<8x128xf32, #tpu.memory_space<vmem>>, vector<8x128xf32>
    tpu.vector_store %arg8[%c0_19, %c0_20], %30 {strides = array<i32>} : memref<8x128xf32, #tpu.memory_space<vmem>>, vector<8x128xf32>,
    return
  }
  func.func @transform_0(%arg0: i32) -> (i32, i32) {
    %c0_i32 = arith.constant 0 : i32
    %c0_i32_0 = arith.constant 0 : i32
    return %arg0, %c0_i32 : i32, i32
  }
  func.func @transform_1(%arg0: i32) -> (i32, i32) {
    %c0_i32 = arith.constant 0 : i32
    %c0_i32_0 = arith.constant 0 : i32
    %c0_i32_1 = arith.constant 0 : i32
    return %c0_i32, %c0_i32_0 : i32, i32
  }
  func.func @transform_2(%arg0: i32) -> (i32, i32) {
    %c0_i32 = arith.constant 0 : i32
    %c0_i32_0 = arith.constant 0 : i32
    %c0_i32_1 = arith.constant 0 : i32
    return %c0_i32, %c0_i32_0 : i32, i32
  }
  func.func @transform_3(%arg0: i32) -> (i32, i32) {
    %c0_i32 = arith.constant 0 : i32
    %c0_i32_0 = arith.constant 0 : i32
    %c0_i32_1 = arith.constant 0 : i32
    return %c0_i32, %c0_i32_0 : i32, i32
  }
  func.func @transform_4(%arg0: i32) -> (i32, i32) {
    %c0_i32 = arith.constant 0 : i32
    %c0_i32_0 = arith.constant 0 : i32
    %c0_i32_1 = arith.constant 0 : i32
    return %c0_i32, %c0_i32_0 : i32, i32
  }
  func.func @transform_5(%arg0: i32) -> (i32, i32) {
    %c0_i32 = arith.constant 0 : i32
    %c0_i32_0 = arith.constant 0 : i32
    %c0_i32_1 = arith.constant 0 : i32
    return %c0_i32, %c0_i32_0 : i32, i32
  }
  func.func @transform_6(%arg0: i32) -> (i32, i32) {
    %c0_i32 = arith.constant 0 : i32
    %c0_i32_0 = arith.constant 0 : i32
    %c0_i32_1 = arith.constant 0 : i32
    return %c0_i32, %c0_i32_0 : i32, i32
  }
  func.func @transform_7(%arg0: i32) -> (i32, i32) {
    %c0_i32 = arith.constant 0 : i32
    %c0_i32_0 = arith.constant 0 : i32
    return %arg0, %c0_i32 : i32, i32
  }
}

</mosaic_0001>

<bundles_post_ra>
// kernel: actor_forward.1
= control target key start
LH: loop header
LB: loop body
LE: loop exit
PB: predicated region body
PF: predicated region fallthrough
CT: control target
= control target key end

     0   :  { %v517_v0 = vmov 0.0   ;;  %vm518_vm0 = vmmov 0   ;;  %v366_v43 = vlaneseq  ;;  %s676_s1 = inlined_call_operand.vmem [shape: bf16[128,128], index: 1, kind: input, shape index: {}]   ;;  %s677_s3 = inlined_call_operand.vmem [shape: bf16[128,128], index: 3, kind: input, shape index: {}]   ;;  %s678_s0 = inlined_call_operand.vmem [shape: f32[8,128], index: 0, kind: input, shape index: {}]   ;;  %s679_s5 = inlined_call_operand.vmem [shape: bf16[128,128], index: 5, kind: input, shape index: {}]   ;;  %s680_s2 = inlined_call_operand.vmem [shape: f32[1,128], index: 2, kind: input, shape index: {}]   ;;  %s681_s4 = inlined_call_operand.vmem [shape: f32[1,128], index: 4, kind: input, shape index: {}]   ;;  %s682_s6 = inlined_call_operand.vmem [shape: f32[1,128], index: 6, kind: input, shape index: {}]   ;;  %s683_s7 = inlined_call_operand.vmem [shape: f32[8,128], index: 7, kind: output, shape index: {}]  }
   0x1   :  { %431 = vmatprep.subr.bf16.mxu0 %v517_v0  ;;  %v493_v1 = vld [vmem:[%s676_s1] sm:$0xff]   ;;  %447 = vmatprep.mubr.msk.bf16.mxu0 %vm518_vm0, %v517_v0  ;;  %v494_v2 = vld [vmem:[%s676_s1 + $0x8] sm:$0xff]   ;;  %v495_v3 = vld [vmem:[%s676_s1 + $0x10] sm:$0xff]  }
   0x2   :  { %451 = vmatprep.subr.bf16.mxu1 %v517_v0  ;;  %467 = vmatprep.mubr.msk.bf16.mxu1 %vm518_vm0, %v517_v0  ;;  %v501_v4 = vld [vmem:[%s677_s3] sm:$0xff]   ;;  %v496_v5 = vld [vmem:[%s676_s1 + $0x18] sm:$0xff]   ;;  %v502_v6 = vld [vmem:[%s677_s3 + $0x8] sm:$0xff]   ;;  %v367_v46 = vand.u32 127, %v366_v43 }
   0x3   :  { %432 = vmatpush3.bf16.msra.mxu0 %v493_v1  ;;  %452 = vmatpush3.bf16.msra.mxu1 %v501_v4  ;;  %v497_v7 = vld [vmem:[%s676_s1 + $0x20] sm:$0xff]   ;;  %v503_v8 = vld [vmem:[%s677_s3 + $0x10] sm:$0xff]   ;;  %v498_v9 = vld [vmem:[%s676_s1 + $0x28] sm:$0xff]  }
   0x4   :  { %433 = vmatprep.subr.bf16.mxu0 %v517_v0  ;;  %453 = vmatprep.subr.bf16.mxu1 %v517_v0  ;;  %v504_v10 = vld [vmem:[%s677_s3 + $0x18] sm:$0xff]   ;;  %v499_v11 = vld [vmem:[%s676_s1 + $0x30] sm:$0xff]   ;;  %v505_v12 = vld [vmem:[%s677_s3 + $0x20] sm:$0xff]   ;;  %vm368_vm1 = vcmp.ge.s32.totalorder %v367_v46, 2 }
   0x5   :  { %v500_v13 = vld [vmem:[%s676_s1 + $0x38] sm:$0xff]   ;;  %v27_v14 = vld [vmem:[%s678_s0] sm:$0xff]  ;;  %v506_v15 = vld [vmem:[%s677_s3 + $0x28] sm:$0xff]  }
   0x6   :  { %v28_v16 = vpack.c.bf16 %v27_v14, %v27_v14  ;;  %v507_v17 = vld [vmem:[%s677_s3 + $0x30] sm:$0xff]   ;;  %v508_v18 = vld [vmem:[%s677_s3 + $0x38] sm:$0xff]   ;;  %v509_v19 = vld [vmem:[%s679_s5] sm:$0xff]  }
   0x7   :  { %434 = vmatpush3.bf16.msra.mxu0 %v494_v2  ;;  %454 = vmatpush3.bf16.msra.mxu1 %v502_v6  ;;  %v510_v20 = vld [vmem:[%s679_s5 + $0x8] sm:$0xff]   ;;  %v511_v21 = vld [vmem:[%s679_s5 + $0x10] sm:$0xff]   ;;  %v512_v22 = vld [vmem:[%s679_s5 + $0x18] sm:$0xff]  }
   0x8   :  { %435 = vmatprep.subr.bf16.mxu0 %v517_v0  ;;  %455 = vmatprep.subr.bf16.mxu1 %v517_v0  ;;  %v513_v23 = vld [vmem:[%s679_s5 + $0x20] sm:$0xff]   ;;  %v514_v24 = vld [vmem:[%s679_s5 + $0x28] sm:$0xff]   ;;  %v515_v33 = vld [vmem:[%s679_s5 + $0x30] sm:$0xff]  }
   0x9   :  { %v377_v25 = vld [vmem:[%s680_s2] ss:$0 sm:$0xff]  ;;  %v516_v34 = vld [vmem:[%s679_s5 + $0x38] sm:$0xff]  }
   0xa   :  { %v386_v35 = vld [vmem:[%s681_s4] ss:$0 sm:$0xff] }
   0xb   :  { %436 = vmatpush3.bf16.msra.mxu0 %v495_v3  ;;  %456 = vmatpush3.bf16.msra.mxu1 %v503_v8  ;;  %v395_v44 = vld [vmem:[%s682_s6] ss:$0 sm:$0xff] }
   0xc   :  { %437 = vmatprep.subr.bf16.mxu0 %v517_v0  ;;  %457 = vmatprep.subr.bf16.mxu1 %v517_v0 }
   0xf   :  { %438 = vmatpush3.bf16.msra.mxu0 %v496_v5  ;;  %458 = vmatpush3.bf16.msra.mxu1 %v504_v10 }
  0x10   :  { %439 = vmatprep.subr.bf16.mxu0 %v517_v0  ;;  %459 = vmatprep.subr.bf16.mxu1 %v517_v0 }
  0x13   :  { %440 = vmatpush3.bf16.msra.mxu0 %v497_v7  ;;  %460 = vmatpush3.bf16.msra.mxu1 %v505_v12 }
  0x14   :  { %441 = vmatprep.subr.bf16.mxu0 %v517_v0  ;;  %461 = vmatprep.subr.bf16.mxu1 %v517_v0 }
  0x17   :  { %442 = vmatpush3.bf16.msra.mxu0 %v498_v9  ;;  %462 = vmatpush3.bf16.msra.mxu1 %v506_v15 }
  0x18   :  { %443 = vmatprep.subr.bf16.mxu0 %v517_v0  ;;  %463 = vmatprep.subr.bf16.mxu1 %v517_v0 }
  0x1b   :  { %444 = vmatpush3.bf16.msra.mxu0 %v499_v11  ;;  %464 = vmatpush3.bf16.msra.mxu1 %v507_v17 }
  0x1c   :  { %445 = vmatprep.subr.bf16.mxu0 %v517_v0  ;;  %465 = vmatprep.subr.bf16.mxu1 %v517_v0 }
  0x1f   :  { %446 = vmatpush3.bf16.msra.mxu0 %v500_v13  ;;  %466 = vmatpush3.bf16.msra.mxu1 %v508_v18 }
  0x20   :  { %471 = vmatprep.subr.bf16.mxu0 %v517_v0 }
  0x22   :  { %448 = vmatmul.mubr.bf16.vlgmr.msra.gmra.mrb[0].mxu0 %v28_v16 }
  0x23   :  { %487 = vmatprep.mubr.msk.bf16.mxu0 %vm518_vm0, %v517_v0  ;;  %472 = vmatpush3.bf16.msra.mxu0 %v509_v19 }
  0x24   :  { %473 = vmatprep.subr.bf16.mxu0 %v517_v0 }
  0x27   :  { %474 = vmatpush3.bf16.msra.mxu0 %v510_v20 }
  0x28   :  { %475 = vmatprep.subr.bf16.mxu0 %v517_v0 }
  0x2b   :  { %476 = vmatpush3.bf16.msra.mxu0 %v511_v21 }
  0x2c   :  { %477 = vmatprep.subr.bf16.mxu0 %v517_v0 }
  0x2f   :  { %478 = vmatpush3.bf16.msra.mxu0 %v512_v22 }
  0x30   :  { %479 = vmatprep.subr.bf16.mxu0 %v517_v0 }
  0x33   :  { %480 = vmatpush3.bf16.msra.mxu0 %v513_v23 }
  0x34   :  { %481 = vmatprep.subr.bf16.mxu0 %v517_v0 }
  0x37   :  { %482 = vmatpush3.bf16.msra.mxu0 %v514_v24 }
  0x38   :  { %483 = vmatprep.subr.bf16.mxu0 %v517_v0 }
  0x3b   :  { %484 = vmatpush3.bf16.msra.mxu0 %v515_v33 }
  0x3c   :  { %485 = vmatprep.subr.bf16.mxu0 %v517_v0 }
  0x3f   :  { %486 = vmatpush3.bf16.msra.mxu0 %v516_v34 }
  0xf5   :  { %v134_v26 = vpop.f32.mrb[0].mxu0 }
  0xf6   :  { %v135_v27 = vadd.f32 %v377_v25, %v134_v26  ;;  %v449_v28 = vpop.f32.mrb[1].mxu0 }
  0xf7   :  { %v137_v29 = vpop.f32.mrb[2].mxu0 }
  0xf8   :  { %v140_v30 = vmax.f32 %v135_v27, 0.0  ;;  %v450_v31 = vpop.f32.mrb[3].mxu0 }
  0xfa   :  { %v141_v32 = vpack.c.bf16 %v140_v30, %v140_v30 }
  0xfc   :  { %468 = vmatmul.mubr.bf16.vlgmr.msra.gmra.mrb[0].mxu1 %v141_v32 }
 0x1cf   :  { %v247_v36 = vpop.f32.mrb[0].mxu1 }
 0x1d0   :  { %v248_v37 = vadd.f32 %v386_v35, %v247_v36  ;;  %v469_v38 = vpop.f32.mrb[1].mxu1 }
 0x1d1   :  { %v250_v39 = vpop.f32.mrb[2].mxu1 }
 0x1d2   :  { %v253_v40 = vmax.f32 %v248_v37, 0.0  ;;  %v470_v41 = vpop.f32.mrb[3].mxu1 }
 0x1d4   :  { %v254_v42 = vpack.c.bf16 %v253_v40, %v253_v40 }
 0x1d6   :  { %488 = vmatmul.mubr.bf16.vlgmr.msra.gmra.mrb[4].mxu0 %v254_v42 }
 0x2a9   :  { %v360_v45 = vpop.f32.mrb[4].mxu0 }
 0x2aa   :  { %v361_v47 = vadd.f32 %v395_v44, %v360_v45  ;;  %v489_v48 = vpop.f32.mrb[5].mxu0 }
 0x2ab   :  { %v363_v49 = vpop.f32.mrb[6].mxu0 }
 0x2ac   :  { %v369_v50 = vmax.f32 %v361_v47, -20.0  ;;  %v490_v51 = vpop.f32.mrb[7].mxu0 }
 0x2ae   :  { %v370_v52 = vmin.f32 %v369_v50, 2.0 }
 0x2b0   :  { %v371_v53 = vsel %vm368_vm1, %v370_v52, %v361_v47 }
 0x2b1   :  { %372 = vst [vmem:[%s683_s7] sm:$0xff] %v371_v53 }

</bundles_post_ra>
